<compile_context>
chip_gen: v7x
topology: tpu7x:2x2x1
jax: 0.10.0
libtpu: 0.0.40
codegen_flags: <defaults>
</compile_context>

<pallas_src>
import jax
import jax.numpy as jnp
from jax import lax
from jax.experimental import pallas as pl
from jax.experimental.pallas import tpu as pltpu


def _round_up(n, m):
    return pl.cdiv(n, m) * m


def _make_mlp_kernel(num_layers):
    """Kernel body: x in natural layout, activations in transposed layout.

    Ref order: x_ref, (w0, b0, ..., w_{L-1}, b_{L-1}), out_ref
      x_ref  : (tm, in0)             batch-tile x features (natural layout)
      w0     : (out_pad0, in0)       PyTorch nn.Linear.weight layout (padded out dim)
      w_i    : (out_pad_i, in_pad_i) i in 1..L-2, compute dtype
      w_last : (in_pad_last, 1)      final-layer weight as an f32 column (L >= 2)
      b_i    : (out_pad_i, 1)        f32
      out    : (1, tm)               lane-dense output row
    ReLU after every layer except the last; Dropout == identity at inference.
    """

    def kernel(*refs):
        x_ref = refs[0]
        o_ref = refs[-1]

        # Layer 0: fold the transpose into the MXU contraction — contract x's
        # feature (last) dim against w0's in dim -> (out_pad0, tm), batch on lanes.
        w0 = refs[1][...]
        b0 = refs[2][...].astype(jnp.float32)
        h = lax.dot_general(
            w0, x_ref[...].astype(w0.dtype),
            dimension_numbers=(((1,), (1,)), ((), ())),
            preferred_element_type=jnp.float32) + b0

        if num_layers == 1:
            o_ref[...] = h.astype(o_ref.dtype)
            return

        h = jnp.maximum(h, 0.0)  # ReLU (+ identity eval-mode Dropout), f32 on VPU

        # Hidden layers 1 .. L-2: MXU matmuls in transposed layout, f32 accumulation.
        for i in range(1, num_layers - 1):
            w = refs[1 + 2 * i][...]
            b = refs[2 + 2 * i][...].astype(jnp.float32)
            h = jnp.dot(w, h.astype(w.dtype), preferred_element_type=jnp.float32) + b
            h = jnp.maximum(h, 0.0)

        # Final Linear(out=1): VPU broadcast-mult + sublane (XLU) reduce, all f32.
        w_col = refs[-3][...]                                  # (in_pad_last, 1) f32
        b_last = refs[-2][...]                                 # (1, 1) f32
        out = jnp.sum(w_col * h, axis=0, keepdims=True) + b_last
        o_ref[...] = out.astype(o_ref.dtype)

    return kernel


def plus_minus_predictor_v1(x, weights, biases, *, tm=1024, use_bf16=False):
    """Fused forward pass of PlusMinusPredictorV1 (inference).

    x:        [batch, input_size] float32 (natural layout, fed to the kernel as-is)
    weights:  list of [out_i, in_i] arrays  (PyTorch nn.Linear.weight layout)
    biases:   list of [out_i] arrays        (PyTorch nn.Linear.bias layout)
    tm:       requested batch tile (multiple of 128); sweep 1024-4096. Clamped so
              grid = cdiv(batch, tm) >= 2 when possible (v7x megacore).
    use_bf16: cast MXU operands to bf16 (f32 accumulation; VPU/ReLU work stays f32).
    returns:  [batch, 1] float32
    """
    batch, input_size = x.shape
    num_layers = len(weights)
    assert num_layers >= 1
    out_dims = [int(w.shape[0]) for w in weights]
    in_dims = [input_size] + out_dims[:-1]
    out_last = out_dims[-1]
    assert out_last == 1, "PlusMinusPredictorV1 always ends in Linear(prev, 1)"

    compute_dtype = jnp.bfloat16 if use_bf16 else jnp.float32
    align = 16 if use_bf16 else 8  # bf16 packs two rows per sublane

    # Padded hidden widths (zero padding is numerically exact: pad bias rows are 0,
    # ReLU(0)=0, pad weight columns are 0). Final out dim (1) is left as-is.
    out_pad = [_round_up(d, align) for d in out_dims[:-1]] + [out_last]
    in_pad = [input_size] + out_pad[:-1]

    # Batch tile: multiple of 128; clamp so grid >= 2 (megacore) whenever possible.
    tm_eff = max(128, min(_round_up(int(tm), 128), _round_up(pl.cdiv(batch, 2), 128)))
    grid = (pl.cdiv(batch, tm_eff),)

    # Params in padded (out, in) layout; final layer as an f32 column for the
    # VPU/XLU reduce path. All resident in VMEM via constant index maps.
    params = []
    for i in range(num_layers):
        w, b = weights[i], biases[i]
        if i == num_layers - 1 and num_layers > 1:
            wp = jnp.zeros((in_pad[i], 1), jnp.float32)
            wp = wp.at[:in_dims[i], 0].set(w.reshape(-1).astype(jnp.float32))
        else:
            wp = jnp.zeros((out_pad[i], in_pad[i]), compute_dtype)
            wp = wp.at[:out_dims[i], :in_dims[i]].set(w.astype(compute_dtype))
        bp = jnp.zeros((out_pad[i], 1), jnp.float32)
        bp = bp.at[:out_dims[i], 0].set(b.reshape(-1).astype(jnp.float32))
        params += [wp, bp]

    # Block specs: x/out tiled along the batch axis; params fully resident.
    in_specs = [pl.BlockSpec((tm_eff, input_size), lambda i: (i, 0))]
    for p in params:
        in_specs.append(pl.BlockSpec(p.shape, lambda i: (0, 0)))
    out_spec = pl.BlockSpec((out_last, tm_eff), lambda i: (0, i))

    # Advisory cost estimate (x is now read exactly once from HBM).
    flops = 2 * batch * sum(in_pad[i] * out_pad[i] for i in range(num_layers))
    param_bytes = sum(int(p.size) * p.dtype.itemsize for p in params)
    io_bytes = batch * input_size * 4 + batch * out_last * 4
    cost = pl.CostEstimate(flops=int(flops), transcendentals=0,
                           bytes_accessed=int(io_bytes + param_bytes))

    # VMEM budget: double-buffered x/out tiles, resident params (double-buffered by
    # the default pipeline), two live activation slabs; ~2x headroom, chip-aware cap.
    x_tile_b = tm_eff * input_size * 4
    out_tile_b = out_last * tm_eff * 4
    act_b = 2 * max(out_pad) * tm_eff * 4
    est_vmem = 2 * x_tile_b + 2 * out_tile_b + 2 * param_bytes + act_b
    try:
        phys_vmem = int(pltpu.get_tpu_info().vmem_capacity_bytes)
    except Exception:
        phys_vmem = 64 << 20
    cap = (48 << 20) if phys_vmem <= (64 << 20) else (96 << 20)
    vmem_limit_bytes = int(min(cap, max(32 << 20, 2 * est_vmem)))

    fn = pl.pallas_call(
        _make_mlp_kernel(num_layers),
        out_shape=jax.ShapeDtypeStruct((out_last, batch), jnp.float32),
        grid_spec=pltpu.PrefetchScalarGridSpec(
            num_scalar_prefetch=0,
            grid=grid,
            in_specs=in_specs,
            out_specs=out_spec,
        ),
        compiler_params=pltpu.CompilerParams(
            dimension_semantics=("parallel",),
            vmem_limit_bytes=vmem_limit_bytes,
        ),
        cost_estimate=cost,
    )
    out_t = fn(x, *params)   # (1, batch): lane-dense stores, partial block clipped
    return out_t.T           # (batch, 1)


def init_params(key, input_size, hidden_layers):
    """Deterministic params in PyTorch layout: weight (out,in), bias (out,)."""
    sizes = [input_size] + list(hidden_layers) + [1]
    weights, biases = [], []
    for i in range(len(sizes) - 1):
        key, kw, kb = jax.random.split(key, 3)
        fan_in, fan_out = sizes[i], sizes[i + 1]
        bound = 1.0 / (fan_in ** 0.5)
        weights.append(jax.random.uniform(kw, (fan_out, fan_in), jnp.float32, -bound, bound))
        biases.append(jax.random.uniform(kb, (fan_out,), jnp.float32, -bound, bound))
    return weights, biases


def reference_forward(x, weights, biases):
    h = x
    for i, (w, b) in enumerate(zip(weights, biases)):
        h = h @ w.T + b
        if i < len(weights) - 1:
            h = jnp.maximum(h, 0.0)
    return h


if __name__ == "__main__":
    # Module-consistent small shapes: input_size=32, hidden_layers=[64, 32].
    # batch=200 is deliberately not a multiple of the tile: with the grid>=2 clamp,
    # tm becomes 128 and grid=2 (second tile is a 72-row partial block), so both
    # v7x TensorCores get work and partial-block clipping is exercised.
    input_size = 32
    hidden_layers = [64, 32]
    dropout_rate = 0.1  # identity at inference
    batch = 200

    key = jax.random.PRNGKey(0)
    key, kx = jax.random.split(key)
    x = jax.random.normal(kx, (batch, input_size), dtype=jnp.float32)
    weights, biases = init_params(key, input_size, hidden_layers)

    ref = reference_forward(x, weights, biases)

    out = plus_minus_predictor_v1(x, weights, biases)
    out = jax.block_until_ready(out)
    assert out.shape == (batch, 1)
    assert jnp.allclose(out, ref, atol=1e-4, rtol=1e-4), "f32 mismatch vs reference"

    # bf16 MXU operands / f32 accumulation path (v6e/v7x native), looser tolerance.
    out_bf16 = plus_minus_predictor_v1(x, weights, biases, use_bf16=True)
    out_bf16 = jax.block_until_ready(out_bf16)
    assert out_bf16.shape == (batch, 1)
    assert jnp.allclose(out_bf16, ref, atol=5e-2, rtol=5e-2), "bf16 mismatch vs reference"

    # Larger batch with a bigger tile: tm=512, grid=2, 425-row partial second block.
    key, kx2 = jax.random.split(key)
    x2 = jax.random.normal(kx2, (937, input_size), dtype=jnp.float32)
    ref2 = reference_forward(x2, weights, biases)
    out2 = plus_minus_predictor_v1(x2, weights, biases, tm=512)
    out2 = jax.block_until_ready(out2)
    assert out2.shape == (937, 1)
    assert jnp.allclose(out2, ref2, atol=1e-4, rtol=1e-4), "tiled f32 mismatch vs reference"

    print("KERNEL_OK")
</pallas_src>

<mosaic_0001>
module attributes {stable_mosaic.version = 11 : i64} {
  func.func @kernel(%arg0: i32, %arg1: memref<128x32xf32, #tpu.memory_space<vmem>>, %arg2: memref<64x32xf32, #tpu.memory_space<vmem>>, %arg3: memref<64x1xf32, #tpu.memory_space<vmem>>, %arg4: memref<32x64xf32, #tpu.memory_space<vmem>>, %arg5: memref<32x1xf32, #tpu.memory_space<vmem>>, %arg6: memref<32x1xf32, #tpu.memory_space<vmem>>, %arg7: memref<1x1xf32, #tpu.memory_space<vmem>>, %arg8: memref<1x128xf32, #tpu.memory_space<vmem>>) attributes {dimension_semantics = [#tpu.dimension_semantics<parallel>], iteration_bounds = array<i64: 2>, scalar_prefetch = 0 : i64, scratch_operands = 0 : i64, tpu.core_type = #tpu.core_type<tc>, window_params = [{transform_indices = @transform_0, window_bounds = array<i64: 128, 32>}, {pipeline_mode = #tpu.pipeline_mode<synchronous>, transform_indices = @transform_1, window_bounds = array<i64: 64, 32>}, {pipeline_mode = #tpu.pipeline_mode<synchronous>, transform_indices = @transform_2, window_bounds = array<i64: 64, 1>}, {pipeline_mode = #tpu.pipeline_mode<synchronous>, transform_indices = @transform_3, window_bounds = array<i64: 32, 64>}, {pipeline_mode = #tpu.pipeline_mode<synchronous>, transform_indices = @transform_4, window_bounds = array<i64: 32, 1>}, {pipeline_mode = #tpu.pipeline_mode<synchronous>, transform_indices = @transform_5, window_bounds = array<i64: 32, 1>}, {pipeline_mode = #tpu.pipeline_mode<synchronous>, transform_indices = @transform_6, window_bounds = array<i64: 1, 1>}, {transform_indices = @transform_7, window_bounds = array<i64: 1, 128>}]} {
    %c0 = arith.constant 0 : index
    %c0_0 = arith.constant 0 : index
    %0 = vector.load %arg2[%c0, %c0_0] : memref<64x32xf32, #tpu.memory_space<vmem>>, vector<64x32xf32>
    %c0_1 = arith.constant 0 : index
    %c0_2 = arith.constant 0 : index
    %1 = vector.load %arg3[%c0_1, %c0_2] : memref<64x1xf32, #tpu.memory_space<vmem>>, vector<64x1xf32>
    %c0_3 = arith.constant 0 : index
    %c0_4 = arith.constant 0 : index
    %2 = vector.load %arg1[%c0_3, %c0_4] : memref<128x32xf32, #tpu.memory_space<vmem>>, vector<128x32xf32>
    %cst = arith.constant dense<0.000000e+00> : vector<64x128xf32>
    %3 = tpu.matmul %0, %2, %cst {dimension_numbers = #tpu.dot_dimension_numbers<[1], [1], [0], [0], [0, 0, 1, 0], [], []>} : vector<64x32xf32>, vector<128x32xf32>, vector<64x128xf32> -> vector<64x128xf32>
    %4 = vector.broadcast %1 : vector<64x1xf32> to vector<64x128xf32>
    %5 = arith.addf %3, %4 : vector<64x128xf32>
    %cst_5 = arith.constant 0.000000e+00 : f32
    %6 = vector.broadcast %cst_5 : f32 to vector<64x128xf32>
    %7 = arith.maximumf %5, %6 : vector<64x128xf32>
    %c0_6 = arith.constant 0 : index
    %c0_7 = arith.constant 0 : index
    %8 = vector.load %arg4[%c0_6, %c0_7] : memref<32x64xf32, #tpu.memory_space<vmem>>, vector<32x64xf32>
    %c0_8 = arith.constant 0 : index
    %c0_9 = arith.constant 0 : index
    %9 = vector.load %arg5[%c0_8, %c0_9] : memref<32x1xf32, #tpu.memory_space<vmem>>, vector<32x1xf32>
    %cst_10 = arith.constant dense<0.000000e+00> : vector<32x128xf32>
    %10 = tpu.matmul %8, %7, %cst_10 {dimension_numbers = #tpu.dot_dimension_numbers<[1], [0], [0], [1], [0, 0, 1, 1], [], []>} : vector<32x64xf32>, vector<64x128xf32>, vector<32x128xf32> -> vector<32x128xf32>
    %11 = vector.broadcast %9 : vector<32x1xf32> to vector<32x128xf32>
    %12 = arith.addf %10, %11 : vector<32x128xf32>
    %cst_11 = arith.constant 0.000000e+00 : f32
    %13 = vector.broadcast %cst_11 : f32 to vector<32x128xf32>
    %14 = arith.maximumf %12, %13 : vector<32x128xf32>
    %c0_12 = arith.constant 0 : index
    %c0_13 = arith.constant 0 : index
    %15 = vector.load %arg6[%c0_12, %c0_13] : memref<32x1xf32, #tpu.memory_space<vmem>>, vector<32x1xf32>
    %c0_14 = arith.constant 0 : index
    %c0_15 = arith.constant 0 : index
    %16 = vector.load %arg7[%c0_14, %c0_15] : memref<1x1xf32, #tpu.memory_space<vmem>>, vector<1x1xf32>
    %17 = vector.broadcast %15 : vector<32x1xf32> to vector<32x128xf32>
    %18 = arith.mulf %17, %14 : vector<32x128xf32>
    %cst_16 = arith.constant dense<0.000000e+00> : vector<128xf32>
    %19 = vector.multi_reduction <add>, %18, %cst_16 [0] : vector<32x128xf32> to vector<128xf32>
    %20 = vector.shape_cast %19 : vector<128xf32> to vector<1x128xf32>
    %21 = vector.broadcast %16 : vector<1x1xf32> to vector<1x128xf32>
    %22 = arith.addf %20, %21 : vector<1x128xf32>
    %c0_17 = arith.constant 0 : index
    %c0_18 = arith.constant 0 : index
    %23 = vector.load %arg8[%c0_17, %c0_18] : memref<1x128xf32, #tpu.memory_space<vmem>>, vector<1x128xf32>
    tpu.vector_store %arg8[%c0_17, %c0_18], %22 {strides = array<i32>} : memref<1x128xf32, #tpu.memory_space<vmem>>, vector<1x128xf32>,
    return
  }
  func.func @transform_0(%arg0: i32) -> (i32, i32) {
    %c0_i32 = arith.constant 0 : i32
    %c0_i32_0 = arith.constant 0 : i32
    return %arg0, %c0_i32 : i32, i32
  }
  func.func @transform_1(%arg0: i32) -> (i32, i32) {
    %c0_i32 = arith.constant 0 : i32
    %c0_i32_0 = arith.constant 0 : i32
    %c0_i32_1 = arith.constant 0 : i32
    return %c0_i32, %c0_i32_0 : i32, i32
  }
  func.func @transform_2(%arg0: i32) -> (i32, i32) {
    %c0_i32 = arith.constant 0 : i32
    %c0_i32_0 = arith.constant 0 : i32
    %c0_i32_1 = arith.constant 0 : i32
    return %c0_i32, %c0_i32_0 : i32, i32
  }
  func.func @transform_3(%arg0: i32) -> (i32, i32) {
    %c0_i32 = arith.constant 0 : i32
    %c0_i32_0 = arith.constant 0 : i32
    %c0_i32_1 = arith.constant 0 : i32
    return %c0_i32, %c0_i32_0 : i32, i32
  }
  func.func @transform_4(%arg0: i32) -> (i32, i32) {
    %c0_i32 = arith.constant 0 : i32
    %c0_i32_0 = arith.constant 0 : i32
    %c0_i32_1 = arith.constant 0 : i32
    return %c0_i32, %c0_i32_0 : i32, i32
  }
  func.func @transform_5(%arg0: i32) -> (i32, i32) {
    %c0_i32 = arith.constant 0 : i32
    %c0_i32_0 = arith.constant 0 : i32
    %c0_i32_1 = arith.constant 0 : i32
    return %c0_i32, %c0_i32_0 : i32, i32
  }
  func.func @transform_6(%arg0: i32) -> (i32, i32) {
    %c0_i32 = arith.constant 0 : i32
    %c0_i32_0 = arith.constant 0 : i32
    %c0_i32_1 = arith.constant 0 : i32
    return %c0_i32, %c0_i32_0 : i32, i32
  }
  func.func @transform_7(%arg0: i32) -> (i32, i32) {
    %c0_i32 = arith.constant 0 : i32
    %c0_i32_0 = arith.constant 0 : i32
    return %c0_i32, %arg0 : i32, i32
  }
}

</mosaic_0001>

<bundles_post_ra>
// kernel: tpu_custom_call.1
= control target key start
LH: loop header
LB: loop body
LE: loop exit
PB: predicated region body
PF: predicated region fallthrough
CT: control target
= control target key end

     0   :  { %s1410_s0 = inlined_call_operand.vmem [shape: f32[200,32], index: 0, kind: input, shape index: {}]   ;;  %s1411_s1 = inlined_call_operand.vmem [shape: f32[64,32], index: 1, kind: input, shape index: {}]   ;;  %s1412_s2 = inlined_call_operand.vmem [shape: f32[64,1], index: 2, kind: input, shape index: {}]   ;;  %s1413_s3 = inlined_call_operand.vmem [shape: f32[32,64], index: 3, kind: input, shape index: {}]   ;;  %s1414_s4 = inlined_call_operand.vmem [shape: f32[32,1], index: 4, kind: input, shape index: {}]   ;;  %s1415_s5 = inlined_call_operand.vmem [shape: f32[32,1], index: 5, kind: input, shape index: {}]   ;;  %s1416_s6 = inlined_call_operand.<no memory space> [shape: f32[1,1], index: 6, kind: input, shape index: {}]   ;;  %s1417_s7 = inlined_call_operand.hbm [shape: f32[1,200], index: 7, kind: output, shape index: {}]  }
   0x1   :  { %v12_v0 = vstv %s1416_s6 }
   0x2   :  { %13 = vst [vmem:[#allocation2] sm:$0x1] %v12_v0 }
   0x3   :  { %14 = vsyncpa [#allocation4], 0 }
   0x4   :  { %16 = vsyncpa [#allocation4 + $0x1], 0  ;;  %s1159_s26 = smov 0   ;;  %s1161_s27 = smov 0  }
   0x5   :  { %s1163_s28 = smov 0   ;;  %s1165_s29 = smov 0  }
   0x6 LB: > { %s804_s6 = sadd.s32 4294967295, %s1112_s29   ;;  %s805_s30 = sadd.s32 4294967294, %s1112_s29   ;;  %s1112_s29 = sphi %s1165_s29, %s1425_s29   ;;  %s1108_s28 = sphi %s1163_s28, %s1424_s28   ;;  %s1104_s27 = sphi %s1161_s27, %s1423_s27   ;;  %s1100_s26 = sphi %s1159_s26, %s1422_s26  }
   0x7   : > { %s1182_s8 = sadd.s32 1, %s1112_s29   ;;  %s181_s9 = sadd.s32 1, %s1108_s28 }
   0x8   : > { %s178_s10 = ssub.s32 %s1112_s29, %s1182_s8  ;;  %p191_p0 = scmp.ne.s32.totalorder %s1108_s28, %s1104_s27 }
   0x9   : > { %p179_p1 = scmp.eq.s32.totalorder %s178_s10, 0  ;;  %p192_p2 = scmp.eq.s32.totalorder %s804_s6, 1 }
   0xa   : > { %p197_p3 = scmp.ne.s32.totalorder %s1104_s27, %s1100_s26  ;;  %p198_p4 = scmp.eq.s32.totalorder %s805_s30, 1 }
   0xb   : > { %s1192_s11 = scalar_select %p179_p1, %s1108_s28, %s181_s9  }
   0xc   : > { %p1194_p5 = por %p192_p2, %p191_p0  ;;  %p1198_p6 = por %p198_p4, %p197_p3 }
   0xd   : > { %p808_p7 = scmp.ge.s32.totalorder %s1112_s29, 1  ;;  %p251_p8 = scmp.lt.s32.totalorder %s1112_s29, 3 }
   0xf   : > { %p252_p9 = pnand %p808_p7, %p251_p8 }
  0x10   : > { %s1204_s14 = sshll.u32 (!%p252_p9), %s804_s6, 4  ;;  %vm372_vm0 = vcmask (!%p252_p9), 261120   ;;  %v300_v1 = vld [vmem:[%s1411_s1] sm:$0xff] (!%p252_p9)  ;;  %v1114_v2 = vmov (!%p252_p9), 0   ;;  %v310_v4 = vld [vmem:[%s1412_s2 + $0x10] sm:$0xff] (!%p252_p9)  ;;  %v309_v5 = vld [vmem:[%s1412_s2 + $0x8] sm:$0xff] (!%p252_p9) }
  0x11   : > { %255 = sbr.rel (%p252_p9) target bundleno = 585 (0x249), region = 48  ;;  %p291_p10 = scmp.lt.s32.totalorder (!%p252_p9), %s1204_s14, 24  ;;  %910 = vmatprep.mubr.msk.f32.mxu0 (!%p252_p9), %vm372_vm0, %v300_v1  ;;  %1048 = vset.pattern.permute.xlu0 (!%p252_p9), %v1114_v2  ;;  %v308_v3 = vld [vmem:[%s1412_s2] sm:$0xff] (!%p252_p9)  ;;  %v311_v6 = vld [vmem:[%s1412_s2 + $0x18] sm:$0xff] (!%p252_p9)  ;;  %vm1231_vm1 = vmpackc.low (!%p252_p9), %vm372_vm0, %vm372_vm0  ;;  %vm586_vm2 = vcmask (!%p252_p9), 523264  }
  0x12   : > { %1049 = vset.pattern.permute.xlu1 (!%p252_p9), %v1114_v2  ;;  %334 = vperm.xlu0 (!%p252_p9), %1048, %v308_v3   ;;  %v312_v14 = vld [vmem:[%s1412_s2 + $0x20] sm:$0xff] (!%p252_p9)  ;;  %v313_v15 = vld [vmem:[%s1412_s2 + $0x28] sm:$0xff] (!%p252_p9)  ;;  %v314_v18 = vld [vmem:[%s1412_s2 + $0x30] sm:$0xff] (!%p252_p9)  ;;  %s1115_s25 = smov (!%p252_p9), [#allocation3]  }
  0x13   : > { %344 = vperm.xlu1 (!%p252_p9), %1049, %v310_v4   ;;  %v315_v19 = vld [vmem:[%s1412_s2 + $0x38] sm:$0xff] (!%p252_p9)  ;;  %v562_v21 = vld [vmem:[%s1414_s4] sm:$0xff] (!%p252_p9)  ;;  %v563_v22 = vld [vmem:[%s1414_s4 + $0x8] sm:$0xff] (!%p252_p9)  ;;  %s1054_s6 = sshll.u32 (!%p252_p9), %s1115_s25, 4  ;;  %s1055_s6 = int_to_ptr.vmem [resolvable:$false] %s1054_s6 }
  0x14   : > { %v564_v25 = vld [vmem:[%s1414_s4 + $0x10] sm:$0xff] (!%p252_p9)  ;;  %v565_v26 = vld [vmem:[%s1414_s4 + $0x18] sm:$0xff] (!%p252_p9)  ;;  %v688_v28 = vld [vmem:[%s1415_s5] sm:$0xff] (!%p252_p9)  ;;  %s1056_s30 = scalar_lea.vmem (!%p252_p9), %s1055_s6, 32 }
  0x15   : > { %v689_v29 = vld [vmem:[%s1415_s5 + $0x8] sm:$0xff] (!%p252_p9)  ;;  %v690_v32 = vld [vmem:[%s1415_s5 + $0x10] sm:$0xff] (!%p252_p9)  ;;  %v691_v33 = vld [vmem:[%s1415_s5 + $0x18] sm:$0xff] (!%p252_p9) }
  0x16   : > { %339 = vperm.xlu0 (!%p252_p9), %1048, %v309_v5   ;;  %v692_v35 = vld [vmem:[#allocation2] sm:$0x1] (!%p252_p9)  ;;  %v301_v45 = vld [vmem:[%s1411_s1 + $0x8] sm:$0xff] (!%p252_p9)  ;;  %v302_v46 = vld [vmem:[%s1411_s1 + $0x10] sm:$0xff] (!%p252_p9) }
  0x17   : > { %349 = vperm.xlu1 (!%p252_p9), %1049, %v311_v6   ;;  %v303_v47 = vld [vmem:[%s1411_s1 + $0x18] sm:$0xff] (!%p252_p9)  ;;  %v304_v48 = vld [vmem:[%s1411_s1 + $0x20] sm:$0xff] (!%p252_p9)  ;;  %v305_v49 = vld [vmem:[%s1411_s1 + $0x28] sm:$0xff] (!%p252_p9) }
  0x18   : > { %s292_s17 = scalar_select %p291_p10, %s1204_s14, 24  ;;  %v306_v50 = vld [vmem:[%s1411_s1 + $0x30] sm:$0xff]  ;;  %v307_v51 = vld [vmem:[%s1411_s1 + $0x38] sm:$0xff]  ;;  %v558_v52 = vld [vmem:[%s1413_s3] sm:$0xff] }
  0x19   : > { %938 = vmatprep.mubr.msk.f32.mxu1 %vm586_vm2, %v558_v52 }
  0x1a   : > { %s810_s22 = sshll.u32 %s292_s17, 3  ;;  %354 = vperm.xlu0 %1048, %v312_v14   ;;  %s284_s17 = sand.u32 1, %s1104_s27  }
  0x1b   : > { %s1227_s10 = scalar_lea.vmem %s1410_s0, %s810_s22  ;;  %359 = vperm.xlu1 %1049, %v313_v15   ;;  %s285_s18 = scalar_lea.vmem [#allocation3], %s284_s17 }
  0x1c   : > { %v316_v8 = vld [vmem:[%s1227_s10] sm:$0xff]  ;;  %v317_v9 = vld [vmem:[%s1227_s10 + $0x8] sm:$0xff]  ;;  %v318_v10 = vld [vmem:[%s1227_s10 + $0x10] sm:$0xff]  ;;  %s750_s19 = sshll.u32 %s285_s18, 4  ;;  %s1368_s22 = scalar_lea.hbm %s1417_s7, %s1204_s14  ;;  %s1370_s19 = int_to_ptr.vmem [resolvable:$true] %s750_s19 }
  0x1d   : > { %v944_v11 = vpack.c.bf16 %v317_v9, %v316_v8  ;;  %v319_v12 = vld [vmem:[%s1227_s10 + $0x18] sm:$0xff]  ;;  %v320_v16 = vld [vmem:[%s1227_s10 + $0x20] sm:$0xff]  ;;  %v321_v17 = vld [vmem:[%s1227_s10 + $0x28] sm:$0xff]  ;;  %s738_s23 = scalar_lea.sflag [#allocation4], %s284_s17  ;;  %s1050_s24 = scalar_lea.vmem %s1370_s19, 16 }
  0x1e   : > { %v950_v13 = vpack.c.bf16 %v319_v12, %v318_v10  ;;  %v956_v20 = vpack.c.bf16 %v321_v17, %v320_v16  ;;  %364 = vperm.xlu0 %1048, %v314_v18   ;;  %v322_v23 = vld [vmem:[%s1227_s10 + $0x30] sm:$0xff]  ;;  %v323_v24 = vld [vmem:[%s1227_s10 + $0x38] sm:$0xff]  ;;  %v324_v30 = vld [vmem:[%s1227_s10 + $0x40] sm:$0xff]  ;;  %p1051_p11 = scmp.ne.s32.totalorder %s1370_s19, %s1050_s24  ;;  %p1057_p0 = scmp.lt.s32.totalorder %s1370_s19, %s1055_s6 }
  0x1f   : > { %946 = vmatprep.subr.msk.bf16.mxu0 %vm1231_vm1, %v944_v11  ;;  %369 = vperm.xlu1 %1049, %v315_v19   ;;  %v962_v27 = vpack.c.bf16 %v323_v24, %v322_v23  ;;  %v325_v31 = vld [vmem:[%s1227_s10 + $0x48] sm:$0xff]  ;;  %v326_v36 = vld [vmem:[%s1227_s10 + $0x50] sm:$0xff]  ;;  %v327_v37 = vld [vmem:[%s1227_s10 + $0x58] sm:$0xff]  ;;  %p1058_p1 = scmp.lt.s32.totalorder %s1056_s30, %s1050_s24 }
  0x20   : > { %949 = vmatpush3.bf16.xpose.msk.msra.mxu0 %vm1231_vm1, %v944_v11  ;;  %v968_v34 = vpack.c.bf16 %v325_v31, %v324_v30  ;;  %v974_v38 = vpack.c.bf16 %v327_v37, %v326_v36  ;;  %v328_v39 = vld [vmem:[%s1227_s10 + $0x60] sm:$0xff]  ;;  %v329_v40 = vld [vmem:[%s1227_s10 + $0x68] sm:$0xff]  ;;  %v330_v42 = vld [vmem:[%s1227_s10 + $0x70] sm:$0xff]  ;;  %p1052_p12 = pnand %p1051_p11, %p1194_p5 }
  0x21   : > { %952 = vmatprep.subr.msk.bf16.mxu0 %vm1231_vm1, %v950_v13  ;;  %v980_v41 = vpack.c.bf16 %v329_v40, %v328_v39  ;;  %v331_v43 = vld [vmem:[%s1227_s10 + $0x78] sm:$0xff]  ;;  %p1059_p2 = por %p1058_p1, %p1057_p0 }
  0x22   : > { %568 = vperm.xlu0 %1048, %v562_v21   ;;  %v986_v44 = vpack.c.bf16 %v331_v43, %v330_v42  ;;  %p1053_p13 = pneg %p1052_p12 }
  0x23   : > { %573 = vperm.xlu1 %1049, %v563_v22  }
  0x24   : > { %p1060_p3 = pnand %p1059_p2, %p1053_p13 }
  0x26   : > { %578 = vperm.xlu0 %1048, %v564_v25   ;;  %v559_v25 = vld [vmem:[%s1413_s3 + $0x8] sm:$0xff] }
  0x27   : > { %583 = vperm.xlu1 %1049, %v565_v26   ;;  %v560_v26 = vld [vmem:[%s1413_s3 + $0x10] sm:$0xff] }
  0x28   : > { %955 = vmatpush3.bf16.xpose.msk.msra.mxu0 %vm1231_vm1, %v950_v13 }
  0x29   : > { %958 = vmatprep.subr.msk.bf16.mxu0 %vm1231_vm1, %v956_v20 }
  0x2a   : > { %695 = vperm.xlu0 %1048, %v688_v28  }
  0x2b   : > { %700 = vperm.xlu1 %1049, %v689_v29  }
  0x2e   : > { %705 = vperm.xlu0 %1048, %v690_v32  }
  0x2f   : > { %710 = vperm.xlu1 %1049, %v691_v33  }
  0x30   : > { %961 = vmatpush3.bf16.xpose.msk.msra.mxu0 %vm1231_vm1, %v956_v20 }
  0x31   : > { %964 = vmatprep.subr.msk.bf16.mxu0 %vm1231_vm1, %v962_v27 }
  0x32   : > { %728 = vperm.xlu0 %1048, %v692_v35  }
  0x38   : > { %967 = vmatpush3.bf16.xpose.msk.msra.mxu0 %vm1231_vm1, %v962_v27  ;;  %v561_v27 = vld [vmem:[%s1413_s3 + $0x18] sm:$0xff] }
  0x39   : > { %970 = vmatprep.subr.msk.bf16.mxu0 %vm1231_vm1, %v968_v34 }
  0x40   : > { %973 = vmatpush3.bf16.xpose.msk.msra.mxu0 %vm1231_vm1, %v968_v34 }
  0x41   : > { %976 = vmatprep.subr.msk.bf16.mxu0 %vm1231_vm1, %v974_v38 }
  0x48   : > { %979 = vmatpush3.bf16.xpose.msk.msra.mxu0 %vm1231_vm1, %v974_v38 }
  0x49   : > { %982 = vmatprep.subr.msk.bf16.mxu0 %vm1231_vm1, %v980_v41 }
  0x50   : > { %985 = vmatpush3.bf16.xpose.msk.msra.mxu0 %vm1231_vm1, %v980_v41 }
  0x51   : > { %988 = vmatprep.subr.msk.bf16.mxu0 %vm1231_vm1, %v986_v44 }
  0x58   : > { %991 = vmatpush3.bf16.xpose.msk.msra.mxu0 %vm1231_vm1, %v986_v44 }
  0x5f   : > { %911 = vmatmul.mubr.msk.f32.vlgmr.msra.gmra.mrb[0].mxu0 %vm372_vm0, %v301_v45 }
  0x60   : > { %913 = vmatprep.mubr.msk.f32.mxu0 %vm372_vm0, %v302_v46 }
  0x63   : > { %914 = vmatmul.mubr.msk.f32.gmra.mrb[2].mxu0 %vm372_vm0, %v303_v47 }
  0x64   : > { %916 = vmatprep.mubr.msk.f32.mxu0 %vm372_vm0, %v304_v48 }
  0x67   : > { %917 = vmatmul.mubr.msk.f32.gmra.mrb[4].mxu0 %vm372_vm0, %v305_v49 }
  0x68   : > { %919 = vmatprep.mubr.msk.f32.mxu0 %vm372_vm0, %v306_v50 }
  0x6b   : > { %920 = vmatmul.mubr.msk.f32.gmra.mrb[6].mxu0 %vm372_vm0, %v307_v51 }
  0x91   : > { %v335_v53 = vpop.permute.xlu0 %334 }
  0x92   : > { %v345_v54 = vpop.permute.xlu1 %344 }
  0x95   : > { %v340_v55 = vpop.permute.xlu0 %339 }
  0x96   : > { %v350_v56 = vpop.permute.xlu1 %349 }
  0x99   : > { %v355_v5 = vpop.permute.xlu0 %354 }
  0x9a   : > { %v360_v2 = vpop.permute.xlu1 %359 }
  0x9d   : > { %v365_v17 = vpop.permute.xlu0 %364 }
  0x9e   : > { %v370_v14 = vpop.permute.xlu1 %369 }
  0xa1   : > { %v569_v28 = vpop.permute.xlu0 %568 }
  0xa2   : > { %v574_v29 = vpop.permute.xlu1 %573 }
  0xa5   : > { %v579_v30 = vpop.permute.xlu0 %578 }
  0xa6   : > { %v584_v31 = vpop.permute.xlu1 %583 }
  0xa9   : > { %v696_v36 = vpop.permute.xlu0 %695 }
  0xaa   : > { %v701_v38 = vpop.permute.xlu1 %700 }
  0xad   : > { %v706_v49 = vpop.permute.xlu0 %705 }
  0xae   : > { %v711_v51 = vpop.permute.xlu1 %710 }
 0x132   : > { %v912_v57 = vpop.f32.mrb[0].mxu0 }
 0x133   : > { %v517_v58 = vadd.f32 %v912_v57, %v340_v55  ;;  %v511_v59 = vpop.f32.mrb[1].mxu0 }
 0x134   : > { %v512_v60 = vadd.f32 %v511_v59, %v335_v53 }
 0x135   : > { %v551_v61 = vmax.f32 %v517_v58, 0.0 }
 0x136   : > { %v550_v62 = vmax.f32 %v512_v60, 0.0  ;;  %v915_v63 = vpop.f32.mrb[2].mxu0 }
 0x137   : > { %v527_v0 = vadd.f32 %v915_v63, %v350_v56  ;;  %v521_v1 = vpop.f32.mrb[3].mxu0 }
 0x138   : > { %v522_v3 = vadd.f32 %v521_v1, %v345_v54  ;;  %v992_v4 = vpack.c.bf16 %v551_v61, %v550_v62  ;;  %v731_v54 = vlaneseq  ;;  %v729_v62 = vpop.permute.xlu0 %728 }
 0x139   : > { %v553_v6 = vmax.f32 %v527_v0, 0.0 }
 0x13a   : > { %v552_v7 = vmax.f32 %v522_v3, 0.0  ;;  %v918_v8 = vpop.f32.mrb[4].mxu0  ;;  %993 = vmatprep.subr.bf16.mxu1 %v992_v4  ;;  %v732_v57 = vshrl.u32 %v731_v54, 7 }
 0x13b   : > { %v537_v9 = vadd.f32 %v918_v8, %v360_v2  ;;  %v531_v10 = vpop.f32.mrb[5].mxu0  ;;  %995 = vmatpush3.bf16.msra.mxu1 %v992_v4 }
 0x13c   : > { %v996_v11 = vpack.c.bf16 %v553_v6, %v552_v7  ;;  %v532_v12 = vadd.f32 %v531_v10, %v355_v5  ;;  %v733_v60 = vsub.s32 0, %v732_v57 }
 0x13d   : > { %v555_v13 = vmax.f32 %v537_v9, 0.0 }
 0x13e   : > { %v554_v15 = vmax.f32 %v532_v12, 0.0  ;;  %v921_v16 = vpop.f32.mrb[6].mxu0  ;;  %997 = vmatprep.subr.bf16.mxu1 %v996_v11  ;;  %v734_v0 = vrot.slane %v729_v62, %v733_v60 }
 0x13f   : > { %v547_v18 = vadd.f32 %v921_v16, %v370_v14  ;;  %v541_v19 = vpop.f32.mrb[7].mxu0  ;;  %999 = vmatpush3.bf16.msra.mxu1 %v996_v11 }
 0x140   : > { %v1000_v20 = vpack.c.bf16 %v555_v13, %v554_v15  ;;  %v542_v21 = vadd.f32 %v541_v19, %v365_v17 }
 0x141   : > { %v557_v22 = vmax.f32 %v547_v18, 0.0 }
 0x142   : > { %v556_v23 = vmax.f32 %v542_v21, 0.0  ;;  %1001 = vmatprep.subr.bf16.mxu1 %v1000_v20 }
 0x143   : > { %1003 = vmatpush3.bf16.msra.mxu1 %v1000_v20 }
 0x144   : > { %v1004_v24 = vpack.c.bf16 %v557_v22, %v556_v23 }
 0x146   : > { %1005 = vmatprep.subr.bf16.mxu1 %v1004_v24 }
 0x147   : > { %1007 = vmatpush3.bf16.msra.mxu1 %v1004_v24 }
 0x14a   : > { %939 = vmatmul.mubr.msk.f32.vlgmr.msra.gmra.mrb[0].mxu1 %vm586_vm2, %v559_v25 }
 0x14b   : > { %941 = vmatprep.mubr.msk.f32.mxu1 %vm586_vm2, %v560_v26 }
 0x14e   : > { %942 = vmatmul.mubr.msk.f32.gmra.mrb[2].mxu1 %vm586_vm2, %v561_v27 }
 0x21d   : > { %v940_v32 = vpop.f32.mrb[0].mxu1 }
 0x21e   : > { %v671_v33 = vadd.f32 %v940_v32, %v574_v29  ;;  %v665_v34 = vpop.f32.mrb[1].mxu1 }
 0x21f   : > { %v666_v35 = vadd.f32 %v665_v34, %v569_v28 }
 0x220   : > { %v685_v37 = vmax.f32 %v671_v33, 0.0 }
 0x221   : > { %v684_v39 = vmax.f32 %v666_v35, 0.0  ;;  %v943_v40 = vpop.f32.mrb[2].mxu1 }
 0x222   : > { %v714_v41 = vmul.f32 %v701_v38, %v685_v37  ;;  %v681_v42 = vadd.f32 %v943_v40, %v584_v31  ;;  %v675_v43 = vpop.f32.mrb[3].mxu1 }
 0x223   : > { %v713_v44 = vmul.f32 %v696_v36, %v684_v39  ;;  %v676_v45 = vadd.f32 %v675_v43, %v579_v30 }
 0x224   : > { %v687_v47 = vmax.f32 %v681_v42, 0.0 }
 0x225   : > { %v717_v46 = vadd.f32 %v714_v41, %v713_v44  ;;  %v686_v48 = vmax.f32 %v676_v45, 0.0 }
 0x226   : > { %v716_v52 = vmul.f32 %v711_v51, %v687_v47 }
 0x227   : > { %v715_v50 = vmul.f32 %v706_v49, %v686_v48 }
 0x229   : > { %v718_v53 = vadd.f32 %v717_v46, %v715_v50 }
 0x22b   : > { %v719_v55 = vadd.f32 %v718_v53, %v716_v52 }
 0x22d   : > { %v720_v56 = vrot.slane %v719_v55, 4 }
 0x22f   : > { %v721_v58 = vadd.f32 %v720_v56, %v719_v55 }
 0x231   : > { %v722_v59 = vrot.slane %v721_v58, 2 }
 0x233   : > { %v723_v61 = vadd.f32 %v722_v59, %v721_v58 }
 0x235   : > { %v724_v63 = vrot.slane %v723_v61, 1 }
 0x237   : > { %v725_v1 = vadd.f32 %v724_v63, %v723_v61 }
 0x239   : > { %v735_v2 = vadd.f32 %v734_v0, %v725_v1 }
 0x23b   : > { %736 = vst [vmem:[%s285_s18] sm:$0x1] %v735_v2 }
 0x23c   : > { %1063 = shalt.err (!%p1060_p3)
}
 0x23d   : > { %s1064_s14 = scalar_lea.hbm %s1368_s22, 16  ;;  %s1068_s15 = scalar_lea.hbm %s1417_s7, 32 }
 0x23e   : > { %p1065_p4 = scmp.ne.s32.totalorder %s1368_s22, %s1064_s14  ;;  %p1069_p9 = scmp.lt.u32.totalorder %s1368_s22, %s1417_s7 }
 0x23f   : > { %p1070_p10 = scmp.lt.u32.totalorder %s1068_s15, %s1064_s14  ;;  %p1072_p12 = scmp.lt.u32.totalorder %s1064_s14, %s1368_s22 }
 0x240   : > { %p1066_p7 = pnand %p1065_p4, %p1194_p5 }
 0x241   : > { %p1071_p11 = por %p1070_p10, %p1069_p9 }
 0x242   : > { %p1067_p8 = pneg %p1066_p7 }
 0x243   : > { %p1073_p13 = por %p1072_p12, %p1071_p11 }
 0x245   : > { %p1074_p0 = pnand %p1073_p13, %p1067_p8 }
 0x247   : > { %1077 = shalt.err (!%p1074_p0)
}
 0x248   : > { %1008 = dma.vmem_to_hbm [thread:$0]  (%p1194_p5), %s1370_s19, 16, %s1368_s22, %s738_s23  }
 0x249 PF: > { %p1014_p1 = scmp.ge.s32.totalorder %s1112_s29, 2  ;;  %s762_s18 = sand.u32 1, %s1100_s26  }
 0x24a   : > { %s763_s20 = scalar_lea.sflag [#allocation4], %s762_s18 }
 0x24b   : > { %p1011_p2 = pnand %p1014_p1, %p1198_p6 }
 0x24d   : > { %1095 = dma.done.wait (!%p1011_p2), %s763_s20, 16  }
 0x24e   : > { %1097 = vsyncadd (!%p1011_p2), %s763_s20, 4294967280  ;;  %p19_p3 = scmp.ge.s32.totalorder %s1182_s8, 4   ;;  %s1422_s26 = smov %s1104_s27 }
 0x24f   : > { %s1423_s27 = smov %s1108_s28  ;;  %s1424_s28 = smov %s1192_s11 }
 0x250   : > { %s1425_s29 = smov %s1182_s8  ;;  %21 = sbr.rel (!%p19_p3) target bundleno = 6 (0x6), region = 83 }
 0x257   :  { %767 = vsyncpa [#allocation4], 1 }
 0x258   :  { %769 = vsyncpa [#allocation4 + $0x1], 1 }

</bundles_post_ra>
